<compile_context>
chip_gen: v6e
topology: v6e:2x2x1
jax: 0.10.0
libtpu: 0.0.40
codegen_flags: <defaults>
</compile_context>

<pallas_src>
import functools

import jax
import jax.numpy as jnp
from jax.experimental import pallas as pl
from jax.experimental.pallas import tpu as pltpu


# ---------------------------------------------------------------------------
# Generation-dependent VMEM budgets.
# ---------------------------------------------------------------------------
def _vmem_budgets():
    """(per-block budget for pipelined in+out slabs, vmem_limit_bytes)."""
    vmem_bytes = None
    try:
        vmem_bytes = getattr(pltpu.get_tpu_info(), "vmem_capacity_bytes", None)
    except Exception:
        vmem_bytes = None
    if vmem_bytes is not None and vmem_bytes >= 128 * 1024 * 1024:
        # v5e / v6e: 128 MiB physical VMEM -> large tiles, long DMAs.
        return 72 * 1024 * 1024, 100 * 1024 * 1024
    # v7x (64 MiB physical) or unknown generation: stay conservative.
    return 24 * 1024 * 1024, 44 * 1024 * 1024


# ---------------------------------------------------------------------------
# Kernels.
# ---------------------------------------------------------------------------
def _se_fused_kernel(x_ref, w1_ref, w2_ref, o_ref, *, inv_hw):
    # x_ref : (Bt, C, hw)  batch tile, lane-dense spatial (full hw per block)
    # w1_ref: (C, Cr)      first linear (transposed from torch (out,in) layout)
    # w2_ref: (Cr, C)      second linear (transposed)
    # Squeeze: spatial mean in f32 (lane tail of a non-multiple-of-128 hw is
    # handled by Mosaic's masked vld since the block spans the full hw).
    # TODO(synk): on v7x with bf16 inputs, offload this reduction to the idle
    # MXU if the cast + tree-add path ever saturates the 4 VALU slots.
    y = jnp.sum(x_ref[...].astype(jnp.float32), axis=-1) * inv_hw        # (Bt, C)

    # Excite: Linear -> ReLU -> Linear -> Sigmoid (tiny f32 gate path).
    h = jnp.maximum(
        jnp.dot(y, w1_ref[...].astype(jnp.float32),
                preferred_element_type=jnp.float32), 0.0)                # (Bt, Cr)
    s = jax.nn.sigmoid(
        jnp.dot(h, w2_ref[...].astype(jnp.float32),
                preferred_element_type=jnp.float32))                     # (Bt, C)

    # Scale: stream x again in native dtype (no full-tile f32 temporary held).
    o_ref[...] = x_ref[...] * s[:, :, None].astype(o_ref.dtype)


def _se_gate_kernel(x_ref, w1_ref, w2_ref, g_ref, *, inv_hw, hw, thw):
    # Fallback path, pass 1: per-sample gate with the spatial axis tiled.
    # g_ref (1, C, 1) doubles as the running-sum accumulator across t steps.
    t = pl.program_id(1)

    @pl.when(t == 0)
    def _():
        g_ref[...] = jnp.zeros_like(g_ref)

    xf = x_ref[...].astype(jnp.float32)                                  # (1, C, thw)
    if hw % thw != 0:
        # Mask garbage lanes of the (possibly partial) last spatial tile.
        lane = jax.lax.broadcasted_iota(jnp.int32, xf.shape, 2)
        xf = jnp.where(lane < (hw - t * thw), xf, 0.0)
    g_ref[...] += jnp.sum(xf, axis=-1, keepdims=True)                    # (1, C, 1)

    @pl.when(t == pl.num_programs(1) - 1)
    def _():
        y = g_ref[...][..., 0] * inv_hw                                   # (1, C)
        h = jnp.maximum(
            jnp.dot(y, w1_ref[...].astype(jnp.float32),
                    preferred_element_type=jnp.float32), 0.0)
        s = jax.nn.sigmoid(
            jnp.dot(h, w2_ref[...].astype(jnp.float32),
                    preferred_element_type=jnp.float32))                  # (1, C)
        g_ref[...] = s[..., None]


def _se_scale_kernel(x_ref, g_ref, o_ref):
    # Fallback path, pass 2: elementwise scale, streaming x once more.
    o_ref[...] = x_ref[...] * g_ref[...].astype(o_ref.dtype)             # (1,C,thw)*(1,C,1)


# ---------------------------------------------------------------------------
# Tiling choosers.
# ---------------------------------------------------------------------------
def _choose_batch_tile(B, per_sample_block_bytes, budget):
    """Largest batch tile that fits `budget`; prefers an even grid-step count
    (balanced megacore sharding on v7x).  Returns None if bt=1 doesn't fit."""
    max_bt = budget // per_sample_block_bytes
    if max_bt < 1:
        return None
    max_bt = int(min(max_bt, B))
    min_steps = pl.cdiv(B, max_bt)
    for steps in range(min_steps, 2 * min_steps + 2):
        bt = pl.cdiv(B, steps)
        if pl.cdiv(B, bt) % 2 == 0:
            return bt
    return max_bt


def _choose_spatial_tile(hw, C, itemsize, budget):
    """Spatial tile (multiple of 128, or the full hw) for the fallback path."""
    per_lane = C * itemsize * 4 + (C * 4 if itemsize < 4 else 0)
    max_lanes = max(128, int(budget // per_lane) // 128 * 128)
    return hw if hw <= max_lanes else max_lanes


def _x_block_spec(shape, index_map, extra_buffering):
    """x input BlockSpec; requests 3-deep buffering for tiny per-step slabs."""
    if extra_buffering and hasattr(pl, "Buffered"):
        try:
            return pl.BlockSpec(shape, index_map, pipeline_mode=pl.Buffered(3))
        except TypeError:  # pipeline_mode not supported in this jax version
            pass
    return pl.BlockSpec(shape, index_map)


# ---------------------------------------------------------------------------
# Public wrapper.
# ---------------------------------------------------------------------------
def squeeze_and_excite(x, w1_torch, w2_torch, *, spatial_block=None,
                       force_spatial_tiling=False):
    """SqueezeAndExcite forward.

    x        : (B, C, H, W) NCHW activations.
    w1_torch : (C//r, C)  first  nn.Linear weight (torch (out,in) layout, bias=False).
    w2_torch : (C, C//r)  second nn.Linear weight.
    """
    B, C, H, W = x.shape
    hw = H * W
    cr = w1_torch.shape[0]
    itemsize = jnp.dtype(x.dtype).itemsize

    x3 = x.reshape(B, C, hw)     # free layout-preserving reshape; no pad, no slice
    w1 = w1_torch.T              # (C, Cr):  y @ w1 == y @ W1^T (torch Linear)
    w2 = w2_torch.T              # (Cr, C)

    block_budget, vmem_limit = _vmem_budgets()

    # Per-sample block footprint: double-buffered input + output slabs, plus
    # headroom for a possible f32 temporary of a sub-32-bit input tile.
    slab = C * hw * itemsize
    per_sample = 4 * slab + (C * hw * 4 if itemsize < 4 else 0)
    bt = None if force_spatial_tiling else _choose_batch_tile(B, per_sample, block_budget)

    w_bytes = (w1.size * jnp.dtype(w1.dtype).itemsize
               + w2.size * jnp.dtype(w2.dtype).itemsize)

    if bt is not None:
        # ---------------- fused single-pass path (default) ----------------
        num_steps = pl.cdiv(B, bt)
        cost = pl.CostEstimate(
            flops=int(2 * B * C * hw + 4 * B * C * cr),
            transcendentals=int(B * C),
            bytes_accessed=int(2 * B * C * hw * itemsize + w_bytes),
        )
        x_spec = _x_block_spec(
            (bt, C, hw), lambda b: (b, 0, 0),
            extra_buffering=(bt * slab < (1 << 20)) and num_steps >= 4)

        out3 = pl.pallas_call(
            functools.partial(_se_fused_kernel, inv_hw=1.0 / float(hw)),
            out_shape=jax.ShapeDtypeStruct((B, C, hw), x.dtype),
            grid=(num_steps,),
            in_specs=[x_spec,
                      pl.BlockSpec((C, cr), lambda b: (0, 0)),
                      pl.BlockSpec((cr, C), lambda b: (0, 0))],
            out_specs=pl.BlockSpec((bt, C, hw), lambda b: (b, 0, 0)),
            compiler_params=pltpu.CompilerParams(
                dimension_semantics=("parallel",),
                vmem_limit_bytes=vmem_limit),
            cost_estimate=cost,
        )(x3, w1, w2)
        return out3.reshape(B, C, H, W)

    # -------- fallback: spatially-tiled two-kernel path (huge C*hw) --------
    thw = spatial_block if spatial_block is not None else _choose_spatial_tile(
        hw, C, itemsize, block_budget)
    thw = min(int(thw), hw)
    n_t = pl.cdiv(hw, thw)

    gate_cost = pl.CostEstimate(
        flops=int(2 * B * C * hw + 4 * B * C * cr),
        transcendentals=int(B * C),
        bytes_accessed=int(B * C * hw * itemsize + w_bytes + B * C * 4),
    )
    gate = pl.pallas_call(
        functools.partial(_se_gate_kernel, inv_hw=1.0 / float(hw), hw=hw, thw=thw),
        out_shape=jax.ShapeDtypeStruct((B, C, 1), jnp.float32),
        grid=(B, n_t),
        in_specs=[pl.BlockSpec((1, C, thw), lambda b, t: (b, 0, t)),
                  pl.BlockSpec((C, cr), lambda b, t: (0, 0)),
                  pl.BlockSpec((cr, C), lambda b, t: (0, 0))],
        out_specs=pl.BlockSpec((1, C, 1), lambda b, t: (b, 0, 0)),
        compiler_params=pltpu.CompilerParams(
            dimension_semantics=("parallel", "arbitrary"),
            vmem_limit_bytes=vmem_limit),
        cost_estimate=gate_cost,
    )(x3, w1, w2)

    scale_cost = pl.CostEstimate(
        flops=int(B * C * hw),
        transcendentals=0,
        bytes_accessed=int(2 * B * C * hw * itemsize + B * C * 4),
    )
    out3 = pl.pallas_call(
        _se_scale_kernel,
        out_shape=jax.ShapeDtypeStruct((B, C, hw), x.dtype),
        grid=(B, n_t),
        in_specs=[pl.BlockSpec((1, C, thw), lambda b, t: (b, 0, t)),
                  pl.BlockSpec((1, C, 1), lambda b, t: (b, 0, 0))],
        out_specs=pl.BlockSpec((1, C, thw), lambda b, t: (b, 0, t)),
        compiler_params=pltpu.CompilerParams(
            dimension_semantics=("parallel", "parallel"),
            vmem_limit_bytes=vmem_limit),
        cost_estimate=scale_cost,
    )(x3, gate)
    return out3.reshape(B, C, H, W)


# ---------------------------------------------------------------------------
# Pure-JAX reference mirroring the PyTorch forward (Linear layers bias=False).
# ---------------------------------------------------------------------------
def reference(x, w1_torch, w2_torch):
    y = jnp.mean(x, axis=(2, 3))                       # (B, C)
    y = jnp.maximum(y @ w1_torch.T, 0.0)               # (B, C//r)
    y = jax.nn.sigmoid(y @ w2_torch.T)                 # (B, C)
    return x * y[:, :, None, None]


if __name__ == "__main__":
    B, C, H, W = 2, 16, 16, 16
    reduction = 8
    Cr = C // reduction

    key = jax.random.PRNGKey(0)
    kx, k1, k2, kx2 = jax.random.split(key, 4)

    x = jax.random.normal(kx, (B, C, H, W), dtype=jnp.float32)
    # deterministic torch-Linear-shaped weights: (out_features, in_features), bias=False
    bound1 = 1.0 / (C ** 0.5)
    bound2 = 1.0 / (Cr ** 0.5)
    w1 = jax.random.uniform(k1, (Cr, C), minval=-bound1, maxval=bound1, dtype=jnp.float32)
    w2 = jax.random.uniform(k2, (C, Cr), minval=-bound2, maxval=bound2, dtype=jnp.float32)

    # 1) Fused single-pass path (the default).
    se_fused = jax.jit(squeeze_and_excite)
    out = jax.block_until_ready(se_fused(x, w1, w2))
    ref = reference(x, w1, w2)
    assert out.shape == (B, C, H, W)
    assert jnp.allclose(out, ref, atol=1e-5, rtol=1e-5)

    # 2) Spatially-tiled fallback path (forced), with a non-multiple-of-128
    #    spatial size so the masked partial-tile accumulation is exercised.
    H2, W2 = 20, 10
    x2 = jax.random.normal(kx2, (B, C, H2, W2), dtype=jnp.float32)
    se_tiled = jax.jit(functools.partial(squeeze_and_excite,
                                         spatial_block=128,
                                         force_spatial_tiling=True))
    out2 = jax.block_until_ready(se_tiled(x2, w1, w2))
    ref2 = reference(x2, w1, w2)
    assert out2.shape == (B, C, H2, W2)
    assert jnp.allclose(out2, ref2, atol=1e-5, rtol=1e-5)

    print("KERNEL_OK")
</pallas_src>

<mosaic_0001>
module attributes {stable_mosaic.version = 11 : i64} {
  func.func @_se_fused_kernel(%arg0: i32, %arg1: memref<1x16x256xf32, #tpu.memory_space<vmem>>, %arg2: memref<16x2xf32, #tpu.memory_space<vmem>>, %arg3: memref<2x16xf32, #tpu.memory_space<vmem>>, %arg4: memref<1x16x256xf32, #tpu.memory_space<vmem>>) attributes {dimension_semantics = [#tpu.dimension_semantics<parallel>], iteration_bounds = array<i64: 2>, scalar_prefetch = 0 : i64, scratch_operands = 0 : i64, tpu.core_type = #tpu.core_type<tc>, window_params = [{transform_indices = @transform_0, window_bounds = array<i64: 1, 16, 256>}, {pipeline_mode = #tpu.pipeline_mode<synchronous>, transform_indices = @transform_1, window_bounds = array<i64: 16, 2>}, {pipeline_mode = #tpu.pipeline_mode<synchronous>, transform_indices = @transform_2, window_bounds = array<i64: 2, 16>}, {transform_indices = @transform_3, window_bounds = array<i64: 1, 16, 256>}]} {
    %c0 = arith.constant 0 : index
    %c0_0 = arith.constant 0 : index
    %c0_1 = arith.constant 0 : index
    %0 = vector.load %arg1[%c0, %c0_0, %c0_1] : memref<1x16x256xf32, #tpu.memory_space<vmem>>, vector<1x16x256xf32>
    %cst = arith.constant dense<0.000000e+00> : vector<1x16xf32>
    %1 = vector.multi_reduction <add>, %0, %cst [2] : vector<1x16x256xf32> to vector<1x16xf32>
    %cst_2 = arith.constant 3.906250e-03 : f32
    %2 = vector.broadcast %cst_2 : f32 to vector<1x16xf32>
    %3 = arith.mulf %1, %2 : vector<1x16xf32>
    %c0_3 = arith.constant 0 : index
    %c0_4 = arith.constant 0 : index
    %4 = vector.load %arg2[%c0_3, %c0_4] : memref<16x2xf32, #tpu.memory_space<vmem>>, vector<16x2xf32>
    %cst_5 = arith.constant dense<0.000000e+00> : vector<1x2xf32>
    %5 = tpu.matmul %3, %4, %cst_5 {dimension_numbers = #tpu.dot_dimension_numbers<[1], [0], [0], [1], [0, 0, 1, 1], [], []>} : vector<1x16xf32>, vector<16x2xf32>, vector<1x2xf32> -> vector<1x2xf32>
    %cst_6 = arith.constant 0.000000e+00 : f32
    %6 = vector.broadcast %cst_6 : f32 to vector<1x2xf32>
    %7 = arith.maximumf %5, %6 : vector<1x2xf32>
    %c0_7 = arith.constant 0 : index
    %c0_8 = arith.constant 0 : index
    %8 = vector.load %arg3[%c0_7, %c0_8] : memref<2x16xf32, #tpu.memory_space<vmem>>, vector<2x16xf32>
    %cst_9 = arith.constant dense<0.000000e+00> : vector<1x16xf32>
    %9 = tpu.matmul %7, %8, %cst_9 {dimension_numbers = #tpu.dot_dimension_numbers<[1], [0], [0], [1], [0, 0, 1, 1], [], []>} : vector<1x2xf32>, vector<2x16xf32>, vector<1x16xf32> -> vector<1x16xf32>
    %10 = arith.negf %9 : vector<1x16xf32>
    %11 = math.exp %10 : vector<1x16xf32>
    %cst_10 = arith.constant 1.000000e+00 : f32
    %12 = vector.broadcast %cst_10 : f32 to vector<1x16xf32>
    %13 = arith.addf %12, %11 : vector<1x16xf32>
    %14 = arith.divf %12, %13 : vector<1x16xf32>
    %c0_11 = arith.constant 0 : index
    %c0_12 = arith.constant 0 : index
    %c0_13 = arith.constant 0 : index
    %15 = vector.load %arg1[%c0_11, %c0_12, %c0_13] : memref<1x16x256xf32, #tpu.memory_space<vmem>>, vector<1x16x256xf32>
    %16 = vector.shape_cast %14 : vector<1x16xf32> to vector<1x16x1xf32>
    %17 = vector.broadcast %16 : vector<1x16x1xf32> to vector<1x16x256xf32>
    %18 = arith.mulf %15, %17 : vector<1x16x256xf32>
    %c0_14 = arith.constant 0 : index
    %c0_15 = arith.constant 0 : index
    %c0_16 = arith.constant 0 : index
    %19 = vector.load %arg4[%c0_14, %c0_15, %c0_16] : memref<1x16x256xf32, #tpu.memory_space<vmem>>, vector<1x16x256xf32>
    tpu.vector_store %arg4[%c0_14, %c0_15, %c0_16], %18 {strides = array<i32>} : memref<1x16x256xf32, #tpu.memory_space<vmem>>, vector<1x16x256xf32>,
    return
  }
  func.func @transform_0(%arg0: i32) -> (i32, i32, i32) {
    %c0_i32 = arith.constant 0 : i32
    %c0_i32_0 = arith.constant 0 : i32
    %c0_i32_1 = arith.constant 0 : i32
    return %arg0, %c0_i32, %c0_i32_0 : i32, i32, i32
  }
  func.func @transform_1(%arg0: i32) -> (i32, i32) {
    %c0_i32 = arith.constant 0 : i32
    %c0_i32_0 = arith.constant 0 : i32
    %c0_i32_1 = arith.constant 0 : i32
    return %c0_i32, %c0_i32_0 : i32, i32
  }
  func.func @transform_2(%arg0: i32) -> (i32, i32) {
    %c0_i32 = arith.constant 0 : i32
    %c0_i32_0 = arith.constant 0 : i32
    %c0_i32_1 = arith.constant 0 : i32
    return %c0_i32, %c0_i32_0 : i32, i32
  }
  func.func @transform_3(%arg0: i32) -> (i32, i32, i32) {
    %c0_i32 = arith.constant 0 : i32
    %c0_i32_0 = arith.constant 0 : i32
    %c0_i32_1 = arith.constant 0 : i32
    return %arg0, %c0_i32, %c0_i32_0 : i32, i32, i32
  }
}

</mosaic_0001>

<bundles_post_ra>
// kernel: squeeze_and_excite.1
= control target key start
LH: loop header
LB: loop body
LE: loop exit
PB: predicated region body
PF: predicated region fallthrough
CT: control target
= control target key end

     0   :  { %s511_s12 = smov 0   ;;  %s544_s0 = inlined_call_operand.vmem [shape: f32[2,16,256], index: 0, kind: input, shape index: {}]   ;;  %s545_s1 = inlined_call_operand.vmem [shape: f32[16,2], index: 1, kind: input, shape index: {}]   ;;  %s546_s2 = inlined_call_operand.vmem [shape: f32[2,16], index: 2, kind: input, shape index: {}]   ;;  %s547_s3 = inlined_call_operand.vmem [shape: f32[2,16,256], index: 3, kind: output, shape index: {}]  }
   0x1 LB: > { %s433_s13 = sadd.s32 4294967295, %s487_s12   ;;  %p437_p0 = scmp.ge.s32.totalorder %s487_s12, 1  ;;  %s487_s12 = sphi %s511_s12, %s13_s12  }
   0x2   : > { %p137_p1 = scmp.lt.s32.totalorder %s487_s12, 3 }
   0x4   : > { %p138_p2 = pnand %p437_p0, %p137_p1 }
   0x5   : > { %p161_p3 = scmp.lt.s32.totalorder (!%p138_p2), %s433_s13, 1 }
   0x6   : > { %141 = sbr.rel (%p138_p2) target bundleno = 708 (0x2c4), region = 32 }
   0xb   : > { %s549_s13 = smov (!%p161_p3, %s433_s13), 1  ;;  %v489_v6 = vmov 0.0   ;;  %v184_v7 = vld [vmem:[%s545_s1 + $0x8] sm:$0xff]  ;;  %v183_v8 = vld [vmem:[%s545_s1] sm:$0xff]  ;;  %vm490_vm0 = vmmov 0   ;;  %v187_v9 = vlaneseq  ;;  %vm198_vm1 = vcmask 130112  }
   0xc   : > { %s448_s14 = sshll.u32 %s549_s13, 5  ;;  %455 = vmatprep.subr.mxu0 %v489_v6  ;;  %462 = vmatprep.subr.mxu1 %v489_v6  ;;  %vm200_vm2 = vcmask 130048   ;;  %v274_v22 = vld [vmem:[%s546_s2] sm:$0x3]  ;;  %vm279_vm3 = vcmask 1041408   ;;  %vm275_vm4 = vcmask 15360  }
   0xd   : > { %s165_s17 = scalar_lea.vmem %s544_s0, %s448_s14  ;;  %456 = vmatpush3.msra.mxu0 %v184_v7  ;;  %459 = vmatprep.mubr.msk.f32.mxu0 %vm490_vm0, %v489_v6  ;;  %v188_v10 = vand.u32 127, %v187_v9  ;;  %v190_v11 = vshrl.u32 %v187_v9, 7  ;;  %s170_s26 = scalar_lea.vmem %s547_s3, %s448_s14 }
   0xe   : > { %v171_v0 = vld [vmem:[%s165_s17] sm:$0xff]  ;;  %v172_v1 = vld [vmem:[%s165_s17 + $0x8] sm:$0xff]  ;;  %v173_v2 = vld [vmem:[%s165_s17 + $0x10] sm:$0xff]  ;;  %457 = vmatprep.subr.mxu0 %v489_v6  ;;  %464 = vmatprep.mubr.msk.f32.mxu1 %vm490_vm0, %v489_v6 }
   0xf   : > { %v175_v3 = vadd.f32 %v172_v1, %v171_v0  ;;  %v174_v4 = vld [vmem:[%s165_s17 + $0x18] sm:$0xff]  ;;  %458 = vmatpush3.msra.mxu0 %v183_v8  ;;  %v193_v12 = vadd.s32 4294967288, %v188_v10  ;;  %v191_v14 = vsub.s32 %v188_v10, %v190_v11  ;;  %463 = vmatpush3.msk.msra.mxu1 %vm279_vm3, %v274_v22  ;;  %v361_v31 = vsub.s32 0, %v190_v11 }
  0x10   : > { %v178_v5 = vadd.f32 %v174_v4, %v173_v2 }
  0x11   : > { %176 = vadd.xlane.f32.xlu0 %v175_v3  ;;  %v196_v16 = vsub.s32 %v193_v12, %v190_v11 }
  0x15   : > { %179 = vadd.xlane.f32.xlu0 %v178_v5 }
  0x9a   : > { %v177_v13 = vpop.xlane.xlu0 %176 }
  0x9b   : > { %v181_v15 = vmul.f32 0.00390625, %v177_v13 }
  0x9d   : > { %v192_v19 = vrot.slane %v181_v15, %v191_v14 }
  0x9e   : > { %v180_v17 = vpop.xlane.xlu0 %179 }
  0x9f   : > { %v182_v18 = vmul.f32 0.00390625, %v180_v17 }
  0xa1   : > { %v197_v20 = vrot.slane %v182_v18, %v196_v16 }
  0xa3   : > { %v199_v21 = vsel %vm198_vm1, %v197_v20, %v192_v19 }
  0xa4   : > { %460 = vmatmul.mubr.msk.f32.vlgmr.msra.gmra.mxu0 %vm200_vm2, %v199_v21 }
 0x164   : > { %v269_v23 = vpop.f32.mrf.mxu0 }
 0x165   : > { %v273_v24 = vmax.f32 %v269_v23, 0.0 }
 0x166   : > { %v461_v25 = vpop.f32.mrf.mxu0 }
 0x167   : > { %465 = vmatmul.mubr.msk.f32.vlgmr.msra.gmra.mxu1 %vm275_vm4, %v273_v24 }
 0x227   : > { %v349_v26 = vpop.f32.mrf.mxu1 }
 0x228   : > { %v445_v27 = vmul.f32 -1.442695, %v349_v26 }
 0x229   : > { %v466_v28 = vpop.f32.mrf.mxu1 }
 0x22a   : > { %477 = vpow2.f32 %v445_v27 }
 0x237   : > { %v478_v29 = vpop.eup %477 }
 0x238   : > { %v356_v30 = vadd.f32 1.0, %v478_v29 }
 0x23a   : > { %479 = vrcp.f32 %v356_v30 }
 0x247   : > { %v480_v32 = vpop.eup %479 }
 0x248   : > { %v362_v33 = vrot.slane %v480_v32, %v361_v31 }
 0x24a   : > { %364 = vbcast.lane.b32.xlu1 %v362_v33, 256 }
 0x24e   : > { %368 = vbcast.lane.b32.xlu1 %v362_v33, 264 }
 0x2bc   : > { %v365_v34 = vpop.permute.xlu1 %364 }
 0x2bd   : > { %v370_v35 = vmul.f32 %v365_v34, %v171_v0  ;;  %v371_v36 = vmul.f32 %v365_v34, %v172_v1 }
 0x2bf   : > { %374 = vst [vmem:[%s170_s26] sm:$0xff] %v370_v35  ;;  %375 = vst [vmem:[%s170_s26 + $0x8] sm:$0xff] %v371_v36 }
 0x2c0   : > { %v369_v37 = vpop.permute.xlu1 %368 }
 0x2c1   : > { %v372_v38 = vmul.f32 %v369_v37, %v173_v2  ;;  %v373_v39 = vmul.f32 %v369_v37, %v174_v4 }
 0x2c3   : > { %376 = vst [vmem:[%s170_s26 + $0x10] sm:$0xff] %v372_v38  ;;  %377 = vst [vmem:[%s170_s26 + $0x18] sm:$0xff] %v373_v39 }
 0x2c4 PF: > { %s13_s12 = sadd.s32 1, %s487_s12  }
 0x2c5   : > { %p10_p4 = scmp.ge.s32.totalorder %s13_s12, 4  }
 0x2c7   :  { %12 = sbr.rel (!%p10_p4) target bundleno = 1 (0x1), region = 62 }

</bundles_post_ra>
